<compile_context>
chip_gen: v7x
topology: tpu7x:2x2x1
jax: 0.10.0
libtpu: 0.0.40
codegen_flags: <defaults>
</compile_context>

<pallas_src>
import functools
import math

import jax
import jax.numpy as jnp
from jax.experimental import pallas as pl
from jax.experimental.pallas import tpu as pltpu


def attention_block_kernel(x_ref, ln_ref, wq_ref, wkv_ref, w1_ref, w2_ref,
                           o_ref, *, nb_head, d_head, eps, compute_dtype):
    bt, T, C = x_ref.shape
    x3 = x_ref[...]                       # (bt, T, C) f32
    x = x3.reshape(bt * T, C)             # flattened rows (cheap: last dim kept)

    ln = ln_ref[...]                      # (4, C): [g1, b1, g2, b2]
    g1, b1 = ln[0:1, :], ln[1:2, :]
    g2, b2 = ln[2:3, :], ln[3:4, :]

    def layernorm(y, g, b):
        mu = jnp.mean(y, axis=-1, keepdims=True)
        var = jnp.mean((y - mu) ** 2, axis=-1, keepdims=True)
        return (y - mu) * jax.lax.rsqrt(var + eps) * g + b

    # ---- LayerNorm 1 -------------------------------------------------------
    h = layernorm(x, g1, b1)              # (bt*T, C) f32

    # ---- Rank-1 multi-head attention (no (T,T) ever materialized) ----------
    # q projection: bf16 operands, f32 accumulation.
    q = jnp.dot(h.astype(compute_dtype), wq_ref[...],
                preferred_element_type=jnp.float32)          # (bt*T, C)

    # K / V are only ever needed through their per-batch column sums, and the
    # projection is linear, so project the per-batch sum of h instead.
    h3 = h.reshape(bt, T, C)
    hsum = jnp.sum(h3, axis=1)                                 # (bt, C)
    kvsum = jnp.dot(hsum.astype(compute_dtype), wkv_ref[...],
                    preferred_element_type=jnp.float32)        # (bt, 2C)
    scale = 1.0 / math.sqrt(d_head)
    ksum = kvsum[:, :C] * scale          # fold 1/sqrt(d_head) here (bt, C)
    vsum = kvsum[:, C:]                  # (bt, C)

    # One-hot head-segment matrices built from 2-D iota (no transposes).
    c_idx = jax.lax.broadcasted_iota(jnp.int32, (C, nb_head), 0)
    h_idx = jax.lax.broadcasted_iota(jnp.int32, (C, nb_head), 1)
    seg = ((c_idx >= h_idx * d_head) &
           (c_idx < (h_idx + 1) * d_head)).astype(jnp.float32)     # (C, nbh)
    cT_idx = jax.lax.broadcasted_iota(jnp.int32, (nb_head, C), 1)
    hT_idx = jax.lax.broadcasted_iota(jnp.int32, (nb_head, C), 0)
    segT = ((cT_idx >= hT_idx * d_head) &
            (cT_idx < (hT_idx + 1) * d_head)).astype(jnp.float32)  # (nbh, C)

    # scores[b,t,h] = scale * sum_{d in head h} q[b,t,d] * ksum[b,d]
    q3 = q.reshape(bt, T, C)
    tmp = (q3 * ksum[:, None, :]).reshape(bt * T, C)               # f32
    scores = jnp.dot(tmp, seg, preferred_element_type=jnp.float32) # (bt*T, nbh)
    s3 = scores.reshape(bt, T, nb_head)

    # softmax over the sequence axis (== PyTorch softmax(dim=1))
    m = jnp.max(s3, axis=1, keepdims=True)
    e = jnp.exp(s3 - m)
    w = e * pl.reciprocal(jnp.sum(e, axis=1, keepdims=True), approx=True)

    # head_out[b,t,c] = w[b,t,head(c)] * vsum[b,c]
    w_exp = jnp.dot(w.reshape(bt * T, nb_head), segT,
                    preferred_element_type=jnp.float32)            # (bt*T, C)
    attn_out = w_exp.reshape(bt, T, C) * vsum[:, None, :]

    # ---- Residual 1 --------------------------------------------------------
    x1 = x3 + attn_out
    x1f = x1.reshape(bt * T, C)

    # ---- LayerNorm 2 + FeedForward -----------------------------------------
    h2 = layernorm(x1f, g2, b2)
    ff = jnp.maximum(
        jnp.dot(h2.astype(compute_dtype), w1_ref[...],
                preferred_element_type=jnp.float32), 0.0)
    ff = jnp.dot(ff.astype(compute_dtype), w2_ref[...],
                 preferred_element_type=jnp.float32)
    # TODO(synk): nn.Dropout(p=0.2) treated as eval-mode identity (deterministic forward).

    # ---- Residual 2 --------------------------------------------------------
    o_ref[...] = (x1f + ff).reshape(bt, T, C).astype(o_ref.dtype)


def _pick_block_b(B, max_bt=8):
    """Batch several examples per grid step (amortize per-step overhead) while
    keeping >=2 grid steps when possible so both v7x TensorCores are busy."""
    bt = max(1, min(max_bt, B // 2)) if B >= 2 else 1
    while B % bt:
        bt -= 1
    return bt


def attention_block(x, params, nb_head, eps=1e-5, max_block_b=8,
                    compute_dtype=jnp.bfloat16):
    B, T, C = x.shape
    d_head = C // nb_head
    bt = _pick_block_b(B, max_block_b)

    # Fuse parameters host-side to cut DMA count / VMEM buffers.
    ln = jnp.stack([params["ln1_g"], params["ln1_b"],
                    params["ln2_g"], params["ln2_b"]], axis=0)      # (4, C) f32
    wq = params["wq"].astype(compute_dtype)                          # (C, C)
    wkv = jnp.concatenate([params["wk"], params["wv"]],
                          axis=1).astype(compute_dtype)              # (C, 2C)
    w1 = params["w1"].astype(compute_dtype)
    w2 = params["w2"].astype(compute_dtype)

    kernel = functools.partial(attention_block_kernel, nb_head=nb_head,
                               d_head=d_head, eps=eps,
                               compute_dtype=compute_dtype)
    const = lambda b: (0, 0)

    return pl.pallas_call(
        kernel,
        out_shape=jax.ShapeDtypeStruct((B, T, C), x.dtype),
        grid_spec=pltpu.PrefetchScalarGridSpec(
            num_scalar_prefetch=0,
            grid=(B // bt,),
            in_specs=[
                pl.BlockSpec((bt, T, C), lambda b: (b, 0, 0)),   # x block
                pl.BlockSpec((4, C), const),                     # LN params
                pl.BlockSpec((C, C), const),                     # Wq
                pl.BlockSpec((C, 2 * C), const),                 # [Wk | Wv]
                pl.BlockSpec((C, C), const),                     # FF linear1
                pl.BlockSpec((C, C), const),                     # FF linear2
            ],
            out_specs=pl.BlockSpec((bt, T, C), lambda b: (b, 0, 0)),
        ),
        compiler_params=pltpu.CompilerParams(
            dimension_semantics=("parallel",),
            vmem_limit_bytes=32 * 1024 * 1024,
        ),
    )(x, ln, wq, wkv, w1, w2)


def init_params(key, in_c, nb_head, d_out):
    """Deterministic synthetic init mirroring PyTorch Linear/LayerNorm shapes.

    Weights are produced directly in (in_features, out_features) orientation;
    per-head q/k/v weights are concatenated along the output dim.
    """
    ks = jax.random.split(key, 5)

    def lin(k, fan_in, fan_out):
        bound = 1.0 / math.sqrt(fan_in)
        return jax.random.uniform(k, (fan_in, fan_out), jnp.float32, -bound, bound)

    return {
        "wq": lin(ks[0], in_c, d_out),
        "wk": lin(ks[1], in_c, d_out),
        "wv": lin(ks[2], in_c, d_out),
        "w1": lin(ks[3], d_out, d_out),
        "w2": lin(ks[4], d_out, d_out),
        "ln1_g": jnp.ones((d_out,), jnp.float32),
        "ln1_b": jnp.zeros((d_out,), jnp.float32),
        "ln2_g": jnp.ones((d_out,), jnp.float32),
        "ln2_b": jnp.zeros((d_out,), jnp.float32),
    }


def reference(x, params, nb_head, eps=1e-5):
    """Pure-JAX f32 replica of the PyTorch forward pass (for verification)."""
    B, T, C = x.shape
    d_out = C
    d_head = d_out // nb_head

    def ln(y, g, b):
        mu = jnp.mean(y, axis=-1, keepdims=True)
        var = jnp.mean((y - mu) ** 2, axis=-1, keepdims=True)
        return (y - mu) / jnp.sqrt(var + eps) * g + b

    h = ln(x, params["ln1_g"], params["ln1_b"])
    outs = []
    for hd in range(nb_head):
        sl = slice(hd * d_head, (hd + 1) * d_head)
        q = h @ params["wq"][:, sl]
        k = h @ params["wk"][:, sl]
        v = h @ params["wv"][:, sl]
        attn = jnp.einsum("btd,bsd->bts", q, k) / math.sqrt(d_head)
        attn = attn @ jnp.ones((T, T), jnp.float32)        # mask of ones
        p = jax.nn.softmax(attn, axis=1)                   # dim=1, as in PyTorch
        outs.append(jnp.einsum("bts,bsd->btd", p, v))
    x1 = x + jnp.concatenate(outs, axis=-1)
    h2 = ln(x1, params["ln2_g"], params["ln2_b"])
    ff = jnp.maximum(h2 @ params["w1"], 0.0) @ params["w2"]
    return x1 + ff


if __name__ == "__main__":
    B, T = 2, 8            # chunk_size == T == 8
    in_c = d_out = 32      # LayerNorm(d_out) applied to x requires in_c == d_out
    nb_head = 4

    key = jax.random.PRNGKey(0)
    kx, kp = jax.random.split(key)
    x = jax.random.normal(kx, (B, T, in_c), jnp.float32)
    params = init_params(kp, in_c, nb_head, d_out)

    out = attention_block(x, params, nb_head)
    out = jax.block_until_ready(out)

    ref = reference(x, params, nb_head)
    assert out.shape == (B, T, d_out)
    # Tolerance accounts for bf16 MXU operands (f32 accumulation) in the kernel.
    assert jnp.allclose(out, ref, atol=5e-2, rtol=5e-2), "mismatch vs pure-JAX reference"

    print("KERNEL_OK")
</pallas_src>

<mosaic_0001>
module attributes {stable_mosaic.version = 11 : i64} {
  func.func @attention_block_kernel(%arg0: i32, %arg1: memref<1x8x32xf32, #tpu.memory_space<vmem>>, %arg2: memref<4x32xf32, #tpu.memory_space<vmem>>, %arg3: memref<32x32xbf16, #tpu.memory_space<vmem>>, %arg4: memref<32x64xbf16, #tpu.memory_space<vmem>>, %arg5: memref<32x32xbf16, #tpu.memory_space<vmem>>, %arg6: memref<32x32xbf16, #tpu.memory_space<vmem>>, %arg7: memref<1x8x32xf32, #tpu.memory_space<vmem>>) attributes {dimension_semantics = [#tpu.dimension_semantics<parallel>], iteration_bounds = array<i64: 2>, scalar_prefetch = 0 : i64, scratch_operands = 0 : i64, tpu.core_type = #tpu.core_type<tc>, window_params = [{transform_indices = @transform_0, window_bounds = array<i64: 1, 8, 32>}, {pipeline_mode = #tpu.pipeline_mode<synchronous>, transform_indices = @transform_1, window_bounds = array<i64: 4, 32>}, {pipeline_mode = #tpu.pipeline_mode<synchronous>, transform_indices = @transform_2, window_bounds = array<i64: 32, 32>}, {pipeline_mode = #tpu.pipeline_mode<synchronous>, transform_indices = @transform_3, window_bounds = array<i64: 32, 64>}, {pipeline_mode = #tpu.pipeline_mode<synchronous>, transform_indices = @transform_4, window_bounds = array<i64: 32, 32>}, {pipeline_mode = #tpu.pipeline_mode<synchronous>, transform_indices = @transform_5, window_bounds = array<i64: 32, 32>}, {transform_indices = @transform_6, window_bounds = array<i64: 1, 8, 32>}]} {
    %c0 = arith.constant 0 : index
    %c0_0 = arith.constant 0 : index
    %c0_1 = arith.constant 0 : index
    %0 = vector.load %arg1[%c0, %c0_0, %c0_1] : memref<1x8x32xf32, #tpu.memory_space<vmem>>, vector<1x8x32xf32>
    %1 = vector.shape_cast %0 : vector<1x8x32xf32> to vector<8x32xf32>
    %c0_2 = arith.constant 0 : index
    %c0_3 = arith.constant 0 : index
    %2 = vector.load %arg2[%c0_2, %c0_3] : memref<4x32xf32, #tpu.memory_space<vmem>>, vector<4x32xf32>
    %3 = vector.extract_strided_slice %2 {offsets = [0, 0], sizes = [1, 32], strides = [1, 1]} : vector<4x32xf32> to vector<1x32xf32>
    %4 = vector.extract_strided_slice %2 {offsets = [1, 0], sizes = [1, 32], strides = [1, 1]} : vector<4x32xf32> to vector<1x32xf32>
    %5 = vector.extract_strided_slice %2 {offsets = [2, 0], sizes = [1, 32], strides = [1, 1]} : vector<4x32xf32> to vector<1x32xf32>
    %6 = vector.extract_strided_slice %2 {offsets = [3, 0], sizes = [1, 32], strides = [1, 1]} : vector<4x32xf32> to vector<1x32xf32>
    %cst = arith.constant dense<0.000000e+00> : vector<8xf32>
    %7 = vector.multi_reduction <add>, %1, %cst [1] : vector<8x32xf32> to vector<8xf32>
    %8 = vector.shape_cast %7 : vector<8xf32> to vector<8x1xf32>
    %cst_4 = arith.constant 3.200000e+01 : f32
    %9 = vector.broadcast %cst_4 : f32 to vector<8x1xf32>
    %10 = arith.divf %8, %9 : vector<8x1xf32>
    %11 = vector.broadcast %10 : vector<8x1xf32> to vector<8x32xf32>
    %12 = arith.subf %1, %11 : vector<8x32xf32>
    %13 = arith.mulf %12, %12 : vector<8x32xf32>
    %cst_5 = arith.constant dense<0.000000e+00> : vector<8xf32>
    %14 = vector.multi_reduction <add>, %13, %cst_5 [1] : vector<8x32xf32> to vector<8xf32>
    %15 = vector.shape_cast %14 : vector<8xf32> to vector<8x1xf32>
    %cst_6 = arith.constant 3.200000e+01 : f32
    %16 = vector.broadcast %cst_6 : f32 to vector<8x1xf32>
    %17 = arith.divf %15, %16 : vector<8x1xf32>
    %18 = vector.broadcast %10 : vector<8x1xf32> to vector<8x32xf32>
    %19 = arith.subf %1, %18 : vector<8x32xf32>
    %cst_7 = arith.constant 9.99999974E-6 : f32
    %20 = vector.broadcast %cst_7 : f32 to vector<8x1xf32>
    %21 = arith.addf %17, %20 : vector<8x1xf32>
    %22 = math.rsqrt %21 : vector<8x1xf32>
    %23 = vector.broadcast %22 : vector<8x1xf32> to vector<8x32xf32>
    %24 = arith.mulf %19, %23 : vector<8x32xf32>
    %25 = vector.broadcast %3 : vector<1x32xf32> to vector<8x32xf32>
    %26 = arith.mulf %24, %25 : vector<8x32xf32>
    %27 = vector.broadcast %4 : vector<1x32xf32> to vector<8x32xf32>
    %28 = arith.addf %26, %27 : vector<8x32xf32>
    %29 = arith.truncf %28 : vector<8x32xf32> to vector<8x32xbf16>
    %c0_8 = arith.constant 0 : index
    %c0_9 = arith.constant 0 : index
    %30 = vector.load %arg3[%c0_8, %c0_9] : memref<32x32xbf16, #tpu.memory_space<vmem>>, vector<32x32xbf16>
    %cst_10 = arith.constant dense<0.000000e+00> : vector<8x32xf32>
    %31 = tpu.matmul %29, %30, %cst_10 {dimension_numbers = #tpu.dot_dimension_numbers<[1], [0], [0], [1], [0, 0, 1, 1], [], []>} : vector<8x32xbf16>, vector<32x32xbf16>, vector<8x32xf32> -> vector<8x32xf32>
    %32 = vector.shape_cast %28 : vector<8x32xf32> to vector<1x8x32xf32>
    %cst_11 = arith.constant dense<0.000000e+00> : vector<1x32xf32>
    %33 = vector.multi_reduction <add>, %32, %cst_11 [1] : vector<1x8x32xf32> to vector<1x32xf32>
    %34 = arith.truncf %33 : vector<1x32xf32> to vector<1x32xbf16>
    %c0_12 = arith.constant 0 : index
    %c0_13 = arith.constant 0 : index
    %35 = vector.load %arg4[%c0_12, %c0_13] : memref<32x64xbf16, #tpu.memory_space<vmem>>, vector<32x64xbf16>
    %cst_14 = arith.constant dense<0.000000e+00> : vector<1x64xf32>
    %36 = tpu.matmul %34, %35, %cst_14 {dimension_numbers = #tpu.dot_dimension_numbers<[1], [0], [0], [1], [0, 0, 1, 1], [], []>} : vector<1x32xbf16>, vector<32x64xbf16>, vector<1x64xf32> -> vector<1x64xf32>
    %37 = vector.extract_strided_slice %36 {offsets = [0, 0], sizes = [1, 32], strides = [1, 1]} : vector<1x64xf32> to vector<1x32xf32>
    %cst_15 = arith.constant 0.353553385 : f32
    %38 = vector.broadcast %cst_15 : f32 to vector<1x32xf32>
    %39 = arith.mulf %37, %38 : vector<1x32xf32>
    %40 = vector.extract_strided_slice %36 {offsets = [0, 32], sizes = [1, 32], strides = [1, 1]} : vector<1x64xf32> to vector<1x32xf32>
    %41 = tpu.iota {dimensions = array<i32: 0>} : vector<32x4xi32>
    %42 = tpu.iota {dimensions = array<i32: 1>} : vector<32x4xi32>
    %c8_i32 = arith.constant 8 : i32
    %43 = vector.broadcast %c8_i32 : i32 to vector<32x4xi32>
    %44 = arith.muli %42, %43 : vector<32x4xi32>
    %45 = arith.cmpi sge, %41, %44 : vector<32x4xi32>
    %c1_i32 = arith.constant 1 : i32
    %46 = vector.broadcast %c1_i32 : i32 to vector<32x4xi32>
    %47 = arith.addi %42, %46 : vector<32x4xi32>
    %c8_i32_16 = arith.constant 8 : i32
    %48 = vector.broadcast %c8_i32_16 : i32 to vector<32x4xi32>
    %49 = arith.muli %47, %48 : vector<32x4xi32>
    %50 = arith.cmpi slt, %41, %49 : vector<32x4xi32>
    %51 = arith.andi %45, %50 : vector<32x4xi1>
    %52 = arith.extui %51 : vector<32x4xi1> to vector<32x4xi32>
    %53 = arith.sitofp %52 : vector<32x4xi32> to vector<32x4xf32>
    %54 = tpu.iota {dimensions = array<i32: 1>} : vector<4x32xi32>
    %55 = tpu.iota {dimensions = array<i32: 0>} : vector<4x32xi32>
    %c8_i32_17 = arith.constant 8 : i32
    %56 = vector.broadcast %c8_i32_17 : i32 to vector<4x32xi32>
    %57 = arith.muli %55, %56 : vector<4x32xi32>
    %58 = arith.cmpi sge, %54, %57 : vector<4x32xi32>
    %c1_i32_18 = arith.constant 1 : i32
    %59 = vector.broadcast %c1_i32_18 : i32 to vector<4x32xi32>
    %60 = arith.addi %55, %59 : vector<4x32xi32>
    %c8_i32_19 = arith.constant 8 : i32
    %61 = vector.broadcast %c8_i32_19 : i32 to vector<4x32xi32>
    %62 = arith.muli %60, %61 : vector<4x32xi32>
    %63 = arith.cmpi slt, %54, %62 : vector<4x32xi32>
    %64 = arith.andi %58, %63 : vector<4x32xi1>
    %65 = arith.extui %64 : vector<4x32xi1> to vector<4x32xi32>
    %66 = arith.sitofp %65 : vector<4x32xi32> to vector<4x32xf32>
    %67 = vector.shape_cast %31 : vector<8x32xf32> to vector<1x8x32xf32>
    %68 = vector.shape_cast %39 : vector<1x32xf32> to vector<1x1x32xf32>
    %69 = vector.broadcast %68 : vector<1x1x32xf32> to vector<1x8x32xf32>
    %70 = arith.mulf %67, %69 : vector<1x8x32xf32>
    %71 = vector.shape_cast %70 : vector<1x8x32xf32> to vector<8x32xf32>
    %cst_20 = arith.constant dense<0.000000e+00> : vector<8x4xf32>
    %72 = tpu.matmul %71, %53, %cst_20 {dimension_numbers = #tpu.dot_dimension_numbers<[1], [0], [0], [1], [0, 0, 1, 1], [], []>} : vector<8x32xf32>, vector<32x4xf32>, vector<8x4xf32> -> vector<8x4xf32>
    %73 = vector.shape_cast %72 : vector<8x4xf32> to vector<1x8x4xf32>
    %cst_21 = arith.constant dense<0xFF800000> : vector<1x4xf32>
    %74 = vector.multi_reduction <maximumf>, %73, %cst_21 [1] : vector<1x8x4xf32> to vector<1x4xf32>
    %75 = vector.shape_cast %74 : vector<1x4xf32> to vector<1x1x4xf32>
    %76 = vector.broadcast %75 : vector<1x1x4xf32> to vector<1x8x4xf32>
    %77 = arith.subf %73, %76 : vector<1x8x4xf32>
    %78 = math.exp %77 : vector<1x8x4xf32>
    %cst_22 = arith.constant dense<0.000000e+00> : vector<1x4xf32>
    %79 = vector.multi_reduction <add>, %78, %cst_22 [1] : vector<1x8x4xf32> to vector<1x4xf32>
    %80 = vector.shape_cast %79 : vector<1x4xf32> to vector<1x1x4xf32>
    %81 = tpu.reciprocal %80 {approx = true} : vector<1x1x4xf32> -> vector<1x1x4xf32>
    %82 = vector.broadcast %81 : vector<1x1x4xf32> to vector<1x8x4xf32>
    %83 = arith.mulf %78, %82 : vector<1x8x4xf32>
    %84 = vector.shape_cast %83 : vector<1x8x4xf32> to vector<8x4xf32>
    %cst_23 = arith.constant dense<0.000000e+00> : vector<8x32xf32>
    %85 = tpu.matmul %84, %66, %cst_23 {dimension_numbers = #tpu.dot_dimension_numbers<[1], [0], [0], [1], [0, 0, 1, 1], [], []>} : vector<8x4xf32>, vector<4x32xf32>, vector<8x32xf32> -> vector<8x32xf32>
    %86 = vector.shape_cast %85 : vector<8x32xf32> to vector<1x8x32xf32>
    %87 = vector.shape_cast %40 : vector<1x32xf32> to vector<1x1x32xf32>
    %88 = vector.broadcast %87 : vector<1x1x32xf32> to vector<1x8x32xf32>
    %89 = arith.mulf %86, %88 : vector<1x8x32xf32>
    %90 = arith.addf %0, %89 : vector<1x8x32xf32>
    %91 = vector.shape_cast %90 : vector<1x8x32xf32> to vector<8x32xf32>
    %cst_24 = arith.constant dense<0.000000e+00> : vector<8xf32>
    %92 = vector.multi_reduction <add>, %91, %cst_24 [1] : vector<8x32xf32> to vector<8xf32>
    %93 = vector.shape_cast %92 : vector<8xf32> to vector<8x1xf32>
    %cst_25 = arith.constant 3.200000e+01 : f32
    %94 = vector.broadcast %cst_25 : f32 to vector<8x1xf32>
    %95 = arith.divf %93, %94 : vector<8x1xf32>
    %96 = vector.broadcast %95 : vector<8x1xf32> to vector<8x32xf32>
    %97 = arith.subf %91, %96 : vector<8x32xf32>
    %98 = arith.mulf %97, %97 : vector<8x32xf32>
    %cst_26 = arith.constant dense<0.000000e+00> : vector<8xf32>
    %99 = vector.multi_reduction <add>, %98, %cst_26 [1] : vector<8x32xf32> to vector<8xf32>
    %100 = vector.shape_cast %99 : vector<8xf32> to vector<8x1xf32>
    %cst_27 = arith.constant 3.200000e+01 : f32
    %101 = vector.broadcast %cst_27 : f32 to vector<8x1xf32>
    %102 = arith.divf %100, %101 : vector<8x1xf32>
    %103 = vector.broadcast %95 : vector<8x1xf32> to vector<8x32xf32>
    %104 = arith.subf %91, %103 : vector<8x32xf32>
    %cst_28 = arith.constant 9.99999974E-6 : f32
    %105 = vector.broadcast %cst_28 : f32 to vector<8x1xf32>
    %106 = arith.addf %102, %105 : vector<8x1xf32>
    %107 = math.rsqrt %106 : vector<8x1xf32>
    %108 = vector.broadcast %107 : vector<8x1xf32> to vector<8x32xf32>
    %109 = arith.mulf %104, %108 : vector<8x32xf32>
    %110 = vector.broadcast %5 : vector<1x32xf32> to vector<8x32xf32>
    %111 = arith.mulf %109, %110 : vector<8x32xf32>
    %112 = vector.broadcast %6 : vector<1x32xf32> to vector<8x32xf32>
    %113 = arith.addf %111, %112 : vector<8x32xf32>
    %114 = arith.truncf %113 : vector<8x32xf32> to vector<8x32xbf16>
    %c0_29 = arith.constant 0 : index
    %c0_30 = arith.constant 0 : index
    %115 = vector.load %arg5[%c0_29, %c0_30] : memref<32x32xbf16, #tpu.memory_space<vmem>>, vector<32x32xbf16>
    %cst_31 = arith.constant dense<0.000000e+00> : vector<8x32xf32>
    %116 = tpu.matmul %114, %115, %cst_31 {dimension_numbers = #tpu.dot_dimension_numbers<[1], [0], [0], [1], [0, 0, 1, 1], [], []>} : vector<8x32xbf16>, vector<32x32xbf16>, vector<8x32xf32> -> vector<8x32xf32>
    %cst_32 = arith.constant 0.000000e+00 : f32
    %117 = vector.broadcast %cst_32 : f32 to vector<8x32xf32>
    %118 = arith.maximumf %116, %117 : vector<8x32xf32>
    %119 = arith.truncf %118 : vector<8x32xf32> to vector<8x32xbf16>
    %c0_33 = arith.constant 0 : index
    %c0_34 = arith.constant 0 : index
    %120 = vector.load %arg6[%c0_33, %c0_34] : memref<32x32xbf16, #tpu.memory_space<vmem>>, vector<32x32xbf16>
    %cst_35 = arith.constant dense<0.000000e+00> : vector<8x32xf32>
    %121 = tpu.matmul %119, %120, %cst_35 {dimension_numbers = #tpu.dot_dimension_numbers<[1], [0], [0], [1], [0, 0, 1, 1], [], []>} : vector<8x32xbf16>, vector<32x32xbf16>, vector<8x32xf32> -> vector<8x32xf32>
    %122 = arith.addf %91, %121 : vector<8x32xf32>
    %123 = vector.shape_cast %122 : vector<8x32xf32> to vector<1x8x32xf32>
    %c0_36 = arith.constant 0 : index
    %c0_37 = arith.constant 0 : index
    %c0_38 = arith.constant 0 : index
    %124 = vector.load %arg7[%c0_36, %c0_37, %c0_38] : memref<1x8x32xf32, #tpu.memory_space<vmem>>, vector<1x8x32xf32>
    tpu.vector_store %arg7[%c0_36, %c0_37, %c0_38], %123 {strides = array<i32>} : memref<1x8x32xf32, #tpu.memory_space<vmem>>, vector<1x8x32xf32>,
    return
  }
  func.func @transform_0(%arg0: i32) -> (i32, i32, i32) {
    %c0_i32 = arith.constant 0 : i32
    %c0_i32_0 = arith.constant 0 : i32
    %c0_i32_1 = arith.constant 0 : i32
    return %arg0, %c0_i32, %c0_i32_0 : i32, i32, i32
  }
  func.func @transform_1(%arg0: i32) -> (i32, i32) {
    %c0_i32 = arith.constant 0 : i32
    %c0_i32_0 = arith.constant 0 : i32
    %c0_i32_1 = arith.constant 0 : i32
    return %c0_i32, %c0_i32_0 : i32, i32
  }
  func.func @transform_2(%arg0: i32) -> (i32, i32) {
    %c0_i32 = arith.constant 0 : i32
    %c0_i32_0 = arith.constant 0 : i32
    %c0_i32_1 = arith.constant 0 : i32
    return %c0_i32, %c0_i32_0 : i32, i32
  }
  func.func @transform_3(%arg0: i32) -> (i32, i32) {
    %c0_i32 = arith.constant 0 : i32
    %c0_i32_0 = arith.constant 0 : i32
    %c0_i32_1 = arith.constant 0 : i32
    return %c0_i32, %c0_i32_0 : i32, i32
  }
  func.func @transform_4(%arg0: i32) -> (i32, i32) {
    %c0_i32 = arith.constant 0 : i32
    %c0_i32_0 = arith.constant 0 : i32
    %c0_i32_1 = arith.constant 0 : i32
    return %c0_i32, %c0_i32_0 : i32, i32
  }
  func.func @transform_5(%arg0: i32) -> (i32, i32) {
    %c0_i32 = arith.constant 0 : i32
    %c0_i32_0 = arith.constant 0 : i32
    %c0_i32_1 = arith.constant 0 : i32
    return %c0_i32, %c0_i32_0 : i32, i32
  }
  func.func @transform_6(%arg0: i32) -> (i32, i32, i32) {
    %c0_i32 = arith.constant 0 : i32
    %c0_i32_0 = arith.constant 0 : i32
    %c0_i32_1 = arith.constant 0 : i32
    return %arg0, %c0_i32, %c0_i32_0 : i32, i32, i32
  }
}

</mosaic_0001>

<bundles_post_ra>
// kernel: tpu_custom_call.1
= control target key start
LH: loop header
LB: loop body
LE: loop exit
PB: predicated region body
PF: predicated region fallthrough
CT: control target
= control target key end

     0   :  { %11 = vsyncpa [#allocation3], 0  ;;  %s1820_s0 = inlined_call_operand.hbm [shape: f32[2,8,32], index: 0, kind: input, shape index: {}]   ;;  %s1821_s1 = inlined_call_operand.hbm [shape: f32[4,32], index: 1, kind: input, shape index: {}]   ;;  %s1822_s2 = inlined_call_operand.hbm [shape: bf16[32,32], index: 2, kind: input, shape index: {}]   ;;  %s1823_s3 = inlined_call_operand.hbm [shape: bf16[32,64], index: 3, kind: input, shape index: {}]   ;;  %s1824_s4 = inlined_call_operand.hbm [shape: bf16[32,32], index: 4, kind: input, shape index: {}]   ;;  %s1825_s5 = inlined_call_operand.vmem [shape: bf16[32,32], index: 5, kind: input, shape index: {}]   ;;  %s1826_s6 = inlined_call_operand.hbm [shape: f32[2,8,32], index: 6, kind: output, shape index: {}]  }
   0x1   :  { %13 = vsyncpa [#allocation3 + $0x1], 0 }
   0x2   :  { %14 = vsyncpa [#allocation6], 0 }
   0x3   :  { %15 = vsyncpa [#allocation9], 0 }
   0x4   :  { %16 = vsyncpa [#allocation4], 0 }
   0x5   :  { %18 = vsyncpa [#allocation4 + $0x1], 0  ;;  %s1463_s21 = smov 0   ;;  %s1465_s22 = smov 0  }
   0x6   :  { %s1467_s23 = smov 0   ;;  %s1469_s24 = smov 0  }
   0x7 LB: > { %s1415_s25 = smov [#allocation5]   ;;  %s1484_s27 = sadd.s32 4294967295, %s1413_s24   ;;  %s1413_s24 = sphi %s1469_s24, %s1850_s24   ;;  %s1409_s23 = sphi %s1467_s23, %s1849_s23   ;;  %s1405_s22 = sphi %s1465_s22, %s1848_s22   ;;  %s1401_s21 = sphi %s1463_s21, %s1847_s21  }
   0x8   : > { %s199_s26 = sshll.u32 %s1415_s25, 4  ;;  %p971_p0 = scmp.ge.s32.totalorder %s1413_s24, 1  ;;  %s200_s26 = int_to_ptr.vmem [resolvable:$true] %s199_s26 }
   0x9   : > { %p1827_p1 = scmp.eq.s32.totalorder %s1484_s27, 0  ;;  %p186_p2 = scmp.lt.s32.totalorder %s1413_s24, 3 }
   0xa   : > { %s1416_s29 = smov [#allocation8]   ;;  %s1417_s8 = smov [#allocation7]  }
   0xb   : > { %p1489_p3 = pnand %p971_p0, %p186_p2  ;;  %s222_s30 = sshll.u32 %s1416_s29, 4  ;;  %s1502_s30 = int_to_ptr.vmem [resolvable:$true] %s222_s30 }
   0xc   : > { %s209_s9 = sshll.u32 %s1417_s8, 4  ;;  %s1197_s12 = scalar_lea.hbm %s1821_s1, 64  ;;  %s1504_s9 = int_to_ptr.vmem [resolvable:$true] %s209_s9 }
   0xd   : > { %s1830_s28 = scalar_select %p1489_p3, 1, 0 }
   0xe   : > { %p1107_p5 = pneg %p1489_p3  ;;  %p1198_p7 = scmp.ne.s32.totalorder %s1821_s1, %s1197_s12 }
   0xf   : > { %p1204_p11 = scmp.lt.u32.totalorder %s1197_s12, %s1821_s1 }
  0x10   : > { %p1498_p6 = pnand %p1107_p5, %p1827_p1 }
  0x12   : > { %p1514_p8 = pneg %p1498_p6 }
  0x14   : > { %p1200_p9 = pnand %p1514_p8, %p1198_p7 }
  0x16   : > { %p1201_p10 = pneg %p1200_p9 }
  0x18   : > { %p1206_p12 = pnand %p1204_p11, %p1201_p10 }
  0x1a   : > { %1209 = shalt.err (!%p1206_p12)
}
  0x1b   : > { %s1210_s18 = scalar_lea.vmem %s200_s26, 64  ;;  %p1218_p5 = scmp.lt.s32.totalorder %s200_s26, %s200_s26 }
  0x1c   : > { %p1211_p13 = scmp.ne.s32.totalorder %s200_s26, %s1210_s18  ;;  %p1219_p4 = scmp.lt.s32.totalorder %s1210_s18, %s1210_s18 }
  0x1e   : > { %p1213_p0 = pnand %p1211_p13, %p1514_p8  ;;  %p1220_p1 = por %p1219_p4, %p1218_p5 }
  0x20   : > { %p1214_p2 = pneg %p1213_p0 }
  0x22   : > { %p1221_p3 = pnand %p1220_p1, %p1214_p2 }
  0x24   : > { %1224 = shalt.err (!%p1221_p3)
}
  0x25   : > { %1110 = dma.hbm_to_vmem [thread:$0]  (!%p1498_p6), %s1821_s1, 64, %s200_s26, [#allocation6]  }
  0x26   : > { %s1225_s8 = scalar_lea.hbm %s1823_s3, 256 }
  0x27   : > { %p1226_p7 = scmp.ne.s32.totalorder %s1823_s3, %s1225_s8  ;;  %p1232_p1 = scmp.lt.u32.totalorder %s1225_s8, %s1823_s3 }
  0x29   : > { %p1228_p9 = pnand %p1226_p7, %p1514_p8 }
  0x2b   : > { %p1229_p4 = pneg %p1228_p9 }
  0x2d   : > { %p1234_p3 = pnand %p1232_p1, %p1229_p4 }
  0x2f   : > { %1237 = shalt.err (!%p1234_p3)
}
  0x30   : > { %s1238_s26 = scalar_lea.vmem %s1502_s30, 256  ;;  %p1246_p13 = scmp.lt.s32.totalorder %s1502_s30, %s1502_s30 }
  0x31   : > { %p1239_p10 = scmp.ne.s32.totalorder %s1502_s30, %s1238_s26  ;;  %p1247_p0 = scmp.lt.s32.totalorder %s1238_s26, %s1238_s26 }
  0x33   : > { %p1241_p11 = pnand %p1239_p10, %p1514_p8  ;;  %p1248_p2 = por %p1247_p0, %p1246_p13 }
  0x35   : > { %p1242_p12 = pneg %p1241_p11 }
  0x37   : > { %p1249_p5 = pnand %p1248_p2, %p1242_p12 }
  0x39   : > { %1252 = shalt.err (!%p1249_p5)
}
  0x3a   : > { %s1418_s14 = smov 64   ;;  %s1419_s16 = smov 4  }
  0x3b   : > { %1116 = dma.hbm_to_vmem [thread:$0]  (!%p1498_p6), %s1823_s3, 256, %s1502_s30, [#allocation9], %s1418_s14, %s1418_s14, %s1419_s16  }
  0x3c   : > { %s1253_s25 = scalar_lea.hbm %s1822_s2, 256 }
  0x3d   : > { %p1254_p7 = scmp.ne.s32.totalorder %s1822_s2, %s1253_s25  ;;  %p1260_p1 = scmp.lt.u32.totalorder %s1253_s25, %s1822_s2 }
  0x3f   : > { %p1256_p9 = pnand %p1254_p7, %p1514_p8 }
  0x41   : > { %p1257_p4 = pneg %p1256_p9 }
  0x43   : > { %p1262_p3 = pnand %p1260_p1, %p1257_p4 }
  0x45   : > { %1265 = shalt.err (!%p1262_p3)
}
  0x46   : > { %s1266_s30 = scalar_lea.vmem %s1504_s9, 256  ;;  %p1274_p13 = scmp.lt.s32.totalorder %s1504_s9, %s1504_s9 }
  0x47   : > { %p1267_p10 = scmp.ne.s32.totalorder %s1504_s9, %s1266_s30  ;;  %p1275_p0 = scmp.lt.s32.totalorder %s1266_s30, %s1266_s30 }
  0x49   : > { %p1269_p11 = pnand %p1267_p10, %p1514_p8  ;;  %p1276_p2 = por %p1275_p0, %p1274_p13 }
  0x4b   : > { %p1270_p12 = pneg %p1269_p11 }
  0x4d   : > { %p1277_p5 = pnand %p1276_p2, %p1270_p12 }
  0x4f   : > { %1280 = shalt.err (!%p1277_p5)
}
  0x50   : > { %1113 = dma.hbm_to_vmem [thread:$0]  (!%p1498_p6), %s1822_s2, 256, %s1504_s9, [#allocation6], %s1418_s14, %s1418_s14, %s1419_s16  }
  0x51   : > { %s1420_s26 = smov [#allocation10]   ;;  %s1281_s20 = scalar_lea.hbm %s1824_s4, 256 }
  0x52   : > { %s235_s17 = sshll.u32 %s1420_s26, 4  ;;  %p1282_p7 = scmp.ne.s32.totalorder %s1824_s4, %s1281_s20  ;;  %s236_s17 = int_to_ptr.vmem [resolvable:$true] %s235_s17 }
  0x53   : > { %p1288_p1 = scmp.lt.u32.totalorder %s1281_s20, %s1824_s4 }
  0x54   : > { %p1284_p9 = pnand %p1282_p7, %p1514_p8 }
  0x56   : > { %p1285_p4 = pneg %p1284_p9 }
  0x58   : > { %p1290_p3 = pnand %p1288_p1, %p1285_p4 }
  0x5a   : > { %1293 = shalt.err (!%p1290_p3)
}
  0x5b   : > { %s1294_s9 = scalar_lea.vmem %s236_s17, 256  ;;  %p1302_p13 = scmp.lt.s32.totalorder %s236_s17, %s236_s17 }
  0x5c   : > { %p1295_p10 = scmp.ne.s32.totalorder %s236_s17, %s1294_s9  ;;  %p1303_p0 = scmp.lt.s32.totalorder %s1294_s9, %s1294_s9 }
  0x5e   : > { %p1297_p11 = pnand %p1295_p10, %p1514_p8  ;;  %p1304_p2 = por %p1303_p0, %p1302_p13 }
  0x60   : > { %p1298_p12 = pneg %p1297_p11 }
  0x62   : > { %p1305_p5 = pnand %p1304_p2, %p1298_p12 }
  0x64   : > { %1308 = shalt.err (!%p1305_p5)
}
  0x65   : > { %1119 = dma.hbm_to_vmem [thread:$0]  (!%p1498_p6), %s1824_s4, 256, %s236_s17, [#allocation9], %s1418_s14, %s1418_s14, %s1419_s16  }
  0x66   : > { %s970_s7 = sadd.s32 4294967294, %s1413_s24   ;;  %s1605_s15 = sadd.s32 1, %s1413_s24  }
  0x67   : > { %s28_s12 = ssub.s32 %s1413_s24, %s1605_s15  ;;  %s31_s13 = sadd.s32 1, %s1409_s23 }
  0x68   : > { %p29_p8 = scmp.eq.s32.totalorder %s28_s12, 0  ;;  %p38_p7 = scmp.ne.s32.totalorder %s1409_s23, %s1405_s22 }
  0x69   : > { %p39_p9 = scmp.eq.s32.totalorder %s1413_s24, 0  ;;  %p44_p4 = scmp.ne.s32.totalorder %s1405_s22, %s1401_s21 }
  0x6a   : > { %s1616_s26 = scalar_select %p29_p8, %s1409_s23, %s31_s13  }
  0x6b   : > { %p1618_p1 = por %p39_p9, %p38_p7  ;;  %p1834_p3 = scmp.eq.s32.totalorder %s1484_s27, 0 }
  0x6c   : > { %p173_p10 = scmp.eq.s32.totalorder %s1484_s27, 1  ;;  %p179_p11 = scmp.eq.s32.totalorder %s970_s7, 1 }
  0x6d   : > { %p1624_p6 = por %p1834_p3, %p44_p4  ;;  %p1132_p12 = scmp.lt.s32.totalorder %s1413_s24, 2 }
  0x6e   : > { %s252_s16 = sand.u32 1, %s1409_s23   ;;  %p1631_p13 = por %p173_p10, %p38_p7 }
  0x6f   : > { %p1635_p0 = por %p179_p11, %p44_p4  ;;  %s977_s20 = sshll.u32 %s252_s16, 3 }
  0x70   : > { %s1836_s17 = scalar_select %p1631_p13, 1, 0 }
  0x71   : > { %s1837_s19 = scalar_select %p1635_p0, 1, 0 }
  0x72   : > { %s978_s25 = sshll.u32 %s1413_s24, 7  ;;  %s256_s9 = scalar_lea.vmem [#allocation2], %s977_s20 }
  0x73   : > { %s1643_s10 = scalar_lea.hbm %s1820_s0, %s978_s25  ;;  %s263_s11 = sshll.u32 %s256_s9, 4  ;;  %s1645_s11 = int_to_ptr.vmem [resolvable:$true] %s263_s11 }
  0x74   : > { %p1649_p2 = pnand %p1132_p12, %p1618_p1  ;;  %s253_s7 = scalar_lea.sflag [#allocation3], %s252_s16 }
  0x75   : > { %s1309_s12 = scalar_lea.hbm %s1643_s10, 128  ;;  %s1314_s25 = scalar_lea.hbm %s1820_s0, 256 }
  0x76   : > { %p1310_p5 = scmp.ne.s32.totalorder %s1643_s10, %s1309_s12  ;;  %p1311_p8 = pneg %p1649_p2 }
  0x77   : > { %p1315_p4 = scmp.lt.u32.totalorder %s1643_s10, %s1820_s0  ;;  %p1316_p1 = scmp.lt.u32.totalorder %s1314_s25, %s1309_s12 }
  0x78   : > { %p1312_p7 = pnand %p1311_p8, %p1310_p5  ;;  %p1318_p10 = scmp.lt.u32.totalorder %s1309_s12, %s1643_s10 }
  0x79   : > { %p1317_p3 = por %p1316_p1, %p1315_p4 }
  0x7a   : > { %p1313_p9 = pneg %p1312_p7 }
  0x7b   : > { %p1319_p11 = por %p1318_p10, %p1317_p3 }
  0x7d   : > { %p1320_p12 = pnand %p1319_p11, %p1313_p9 }
  0x7f   : > { %1323 = shalt.err (!%p1320_p12)
}
  0x80   : > { %s1324_s16 = scalar_lea.vmem %s1645_s11, 128  ;;  %s1421_s8 = smov [#allocation2]  }
  0x81   : > { %p1325_p5 = scmp.ne.s32.totalorder %s1645_s11, %s1324_s16  ;;  %s1329_s9 = sshll.u32 %s1421_s8, 4  ;;  %s1330_s9 = int_to_ptr.vmem [resolvable:$false] %s1329_s9 }
  0x82   : > { %s1331_s13 = scalar_lea.vmem %s1330_s9, 256  ;;  %p1332_p13 = scmp.lt.s32.totalorder %s1645_s11, %s1330_s9 }
  0x83   : > { %p1327_p7 = pnand %p1325_p5, %p1311_p8  ;;  %p1333_p4 = scmp.lt.s32.totalorder %s1331_s13, %s1324_s16 }
  0x85   : > { %p1328_p0 = pneg %p1327_p7  ;;  %p1334_p1 = por %p1333_p4, %p1332_p13 }
  0x87   : > { %p1335_p3 = pnand %p1334_p1, %p1328_p0 }
  0x89   : > { %1338 = shalt.err (!%p1335_p3)
}
  0x8a   : > { %1123 = dma.hbm_to_vmem [thread:$0]  (!%p1649_p2), %s1643_s10, 128, %s1645_s11, %s253_s7  }
  0x8b   : > { %p1839_p9 = scmp.ne.s32.totalorder %s1830_s28, 0 }
  0x8c   : > { %s1681_s12 = sand.u32 (!%p1839_p9), 1, %s1405_s22  }
  0x8d   : > { %272 = sbr.rel (%p1839_p9) target bundleno = 1944 (0x798), region = 44  ;;  %s980_s20 = sshll.u32 (!%p1839_p9), %s1681_s12, 3 }
  0x8e   : > { %s275_s25 = scalar_lea.sflag (!%p1839_p9), [#allocation3], %s1681_s12  ;;  %s278_s18 = scalar_lea.vmem (!%p1839_p9), [#allocation2], %s980_s20 }
  0x94   : > { %1384 = dma.done.wait (%p1624_p6), %s275_s25, 128  }
  0x95   : > { %1386 = vsyncadd (%p1624_p6), %s275_s25, 4294967168  ;;  %p1840_p13 = scmp.eq.s32.totalorder %s1484_s27, 0 }
  0x97   : > { %1388 = dma.done.wait (%p1840_p13), [#allocation6], 320   ;;  %p1841_p0 = pmov %p1840_p13 }
  0x99   : > { %1390 = vsyncadd (%p1841_p0), [#allocation6], 4294966976  ;;  %p1842_p2 = pmov %p1841_p0 }
  0x9a   : > { %p1843_p8 = pmov %p1841_p0 }
  0x9b   : > { %1392 = dma.done.wait (%p1842_p2), [#allocation9], 512  }
  0x9c   : > { %1394 = vsyncadd (%p1843_p8), [#allocation9], 4294966784  ;;  %vm326_vm0 = vcmask 261120   ;;  %v1699_v0 = vld [vmem:[%s278_s18] sm:$0xff]  ;;  %v1181_v7 = vld [vmem:[#allocation7] sm:$0xff]   ;;  %v1422_v8 = vmov 0.0   ;;  %v341_v14 = vlaneseq }
  0x9d   : > { %v327_v1 = vsel %vm326_vm0, %v1699_v0, 0.0  ;;  %1033 = vmatprep.subr.bf16.mxu0 %v1422_v8  ;;  %1041 = vmatprep.subr.bf16.mxu1 %v1422_v8  ;;  %v1182_v9 = vld [vmem:[#allocation7 + $0x8] sm:$0xff]   ;;  %vm1423_vm1 = vmmov 0   ;;  %v1183_v10 = vld [vmem:[#allocation8] sm:$0xff]   ;;  %v1184_v11 = vld [vmem:[#allocation8 + $0x8] sm:$0xff]   ;;  %v1424_v36 = vmov 0.0|0.0  }
  0x9e   : > { %328 = vadd.xlane.f32.xlu0 %v327_v1  ;;  %1034 = vmatpush3.bf16.msra.mxu0 %v1181_v7  ;;  %v1714_v16 = vshrl.u32 %v341_v14, 7  ;;  %v1719_v18 = vld [vmem:[#allocation5] sm:$0xf]  ;;  %v485_v35 = vand.u32 127, %v341_v14  ;;  %v1425_v43 = vmov 1.0|1.0  }
  0x9f   : > { %1037 = vmatprep.mubr.msk.bf16.mxu0 %vm1423_vm1, %v1422_v8  ;;  %1035 = vmatprep.subr.bf16.mxu0 %v1422_v8  ;;  %s1426_s28 = smov 96   ;;  %s1011_s7 = sshll.u32 %s1484_s27, 7 }
  0xa0   : > { %1045 = vmatprep.mubr.msk.bf16.mxu1 %vm1423_vm1, %v1422_v8  ;;  %1042 = vmatpush3.bf16.msra.mxu1 %v1183_v10  ;;  %v1717_v17 = vsub.s32 0, %v1714_v16  ;;  %v348_v19 = vsub.s32 1, %v1714_v16  ;;  %v481_v37 = vadd.s32 8, %v1714_v16  ;;  %v486_v38 = vmul.u32 8, %v485_v35  ;;  %s322_s29 = scalar_lea.vmem [#allocation11], %s980_s20  ;;  %s1775_s13 = scalar_lea.hbm %s1826_s6, %s1011_s7 }
  0xa1   : > { %1043 = vmatprep.subr.bf16.mxu1 %v1422_v8  ;;  %v491_v39 = vadd.s32 1, %v485_v35  ;;  %v482_v41 = vadd.s32 16, %v1714_v16  ;;  %v483_v42 = vadd.s32 24, %v1714_v16  ;;  %v509_v56 = vmul.u32 8, %v1714_v16  ;;  %s862_s16 = sshll.u32 %s322_s29, 4  ;;  %s849_s27 = scalar_lea.sflag [#allocation4], %s1681_s12  ;;  %s1777_s16 = int_to_ptr.vmem [resolvable:$true] %s862_s16 }
  0xa2   : > { %1036 = vmatpush3.bf16.msra.mxu0 %v1182_v9  ;;  %v344_v20 = vrot.slane %v1719_v18, %v1717_v17  ;;  %v349_v23 = vrot.slane %v1719_v18, %v348_v19  ;;  %vm487_vm2 = vcmp.ge.s32.totalorder %v1714_v16, %v486_v38  ;;  %vm488_vm3 = vcmp.ge.s32.totalorder %v481_v37, %v486_v38  ;;  %s1339_s20 = scalar_lea.vmem %s1777_s16, 128  ;;  %p1844_p10 = scmp.ne.s32.totalorder %s1836_s17, 0 }
  0xa3   : > { %1081 = vmatprep.subr.bf16.mxu0 %v1424_v36  ;;  %v492_v40 = vmul.u32 8, %v491_v39  ;;  %vm489_vm9 = vcmp.ge.s32.totalorder %v482_v41, %v486_v38  ;;  %vm490_vm10 = vcmp.ge.s32.totalorder %v483_v42, %v486_v38  ;;  %v511_v57 = vadd.s32 1, %v1714_v16  ;;  %p1340_p6 = scmp.ne.s32.totalorder %s1777_s16, %s1339_s20  ;;  %s1427_s25 = smov [#allocation11]  }
  0xa4   : > { %1044 = vmatpush3.bf16.msra.mxu1 %v1184_v11  ;;  %v722_v38 = vsub.s32 3, %v1714_v16  ;;  %s1343_s18 = sshll.u32 %s1427_s25, 4  ;;  %s1344_s18 = int_to_ptr.vmem [resolvable:$false] %s1343_s18 }
  0xa5   : > { %1060 = vmatprep.subr.mxu1 %v1422_v8  ;;  %vm493_vm4 = vcmp.lt.s32.totalorder %v1714_v16, %v492_v40  ;;  %vm494_vm5 = vcmp.lt.s32.totalorder %v481_v37, %v492_v40  ;;  %vm495_vm11 = vcmp.lt.s32.totalorder %v482_v41, %v492_v40  ;;  %vm496_vm12 = vcmp.lt.s32.totalorder %v483_v42, %v492_v40  ;;  %p1341_p11 = pnand %p1340_p6, %p1844_p10  ;;  %p1346_p5 = scmp.lt.s32.totalorder %s1777_s16, %s1344_s18 }
  0xa6   : > { %vm497_vm6 = vmand %vm487_vm2, %vm493_vm4  ;;  %vm510_vm2 = vcmp.ge.s32.totalorder %v485_v35, %v509_v56  ;;  %v512_v58 = vmul.u32 8, %v511_v57  ;;  %vm618_vm4 = vcmask 1043456   ;;  %v717_v37 = vsub.s32 2, %v1714_v16 }
  0xa7   : > { %vm498_vm7 = vmand %vm488_vm3, %vm494_vm5  ;;  %v723_v42 = vrot.slane %v1719_v18, %v722_v38  ;;  %p1342_p12 = pneg %p1341_p11 }
  0xa8   : > { %vm1082_vm8 = vmpackc.low %vm498_vm7, %vm497_vm6  ;;  %vm513_vm3 = vcmp.lt.s32.totalorder %v485_v35, %v512_v58  ;;  %vm595_vm6 = vcmask 31744   ;;  %v718_v39 = vrot.slane %v1719_v18, %v717_v37 }
  0xa9   : > { %vm499_vm13 = vmand %vm489_vm9, %vm495_vm11 }
  0xaa   : > { %vm500_vm14 = vmand %vm490_vm10, %vm496_vm12 }
  0xab   : > { %vm1085_vm15 = vmpackc.low %vm500_vm14, %vm499_vm13 }
  0xac   : > { %vm514_vm5 = vmand %vm510_vm2, %vm513_vm3 }
  0xad   : > { %v996_v59 = vsel %vm514_vm5, 1.0, %v1422_v8 }
 0x12b   : > { %v329_v2 = vpop.xlane.xlu0 %328 }
 0x12c   : > { %v331_v3 = vmul.f32 0.03125, %v329_v2 }
 0x12e   : > { %v332_v4 = vsub.f32 %v1699_v0, %v331_v3 }
 0x130   : > { %v333_v5 = vmul.f32 %v332_v4, %v332_v4 }
 0x132   : > { %v334_v6 = vsel %vm326_vm0, %v333_v5, 0.0 }
 0x133   : > { %335 = vadd.xlane.f32.xlu0 %v334_v6 }
 0x1c0   : > { %v336_v12 = vpop.xlane.xlu0 %335 }
 0x1c1   : > { %v337_v13 = vmul.f32 0.03125, %v336_v12 }
 0x1c3   : > { %v338_v15 = vadd.f32 1e-05, %v337_v13 }
 0x1c5   : > { %1189 = vrsqrt.f32 %v338_v15 }
 0x1cf   : > { %v1190_v21 = vpop.eup %1189 }
 0x1d0   : > { %v340_v22 = vmul.f32 %v1190_v21, %v332_v4 }
 0x1d2   : > { %v345_v24 = vmul.f32 %v344_v20, %v340_v22 }
 0x1d4   : > { %v350_v25 = vadd.f32 %v349_v23, %v345_v24 }
 0x1d6   : > { %v351_v26 = vpack.c.bf16 %v350_v25, %v350_v25  ;;  %v411_v27 = vsel %vm326_vm0, %v350_v25, 0.0 }
 0x1d7   : > { %v412_v28 = vrot.slane %v411_v27, 4 }
 0x1d8   : > { %1038 = vmatmul.mubr.msk.bf16.vlgmr.msra.gmra.mrb[0].mxu0 %vm326_vm0, %v351_v26 }
 0x1d9   : > { %v413_v29 = vadd.f32 %v412_v28, %v411_v27  ;;  %1057 = vmatprep.mubr.msk.f32.mxu0 %vm1423_vm1, %v1422_v8  ;;  %1083 = vmatpush3.bf16.msk.msra.mxu0 %vm1082_vm8, %v1425_v43 }
 0x1da   : > { %1084 = vmatprep.subr.bf16.mxu0 %v1424_v36 }
 0x1db   : > { %v414_v30 = vrot.slane %v413_v29, 2 }
 0x1dd   : > { %v415_v31 = vadd.f32 %v414_v30, %v413_v29  ;;  %1086 = vmatpush3.bf16.msk.msra.mxu0 %vm1085_vm15, %v1425_v43 }
 0x1de   : > { %1065 = vmatprep.subr.bf16.mxu0 %v1422_v8 }
 0x1df   : > { %v416_v32 = vrot.slane %v415_v31, 1 }
 0x1e1   : > { %v417_v33 = vadd.f32 %v416_v32, %v415_v31  ;;  %v1185_v32 = vld [vmem:[#allocation10] sm:$0xff]  }
 0x1e3   : > { %v418_v34 = vpack.c.bf16 %v417_v33, %v417_v33  ;;  %v1186_v33 = vld [vmem:[#allocation10 + $0x8] sm:$0xff]  }
 0x1e5   : > { %1046 = vmatmul.mubr.msk.bf16.vlgmr.msra.gmra.mrb[0].mxu1 %vm326_vm0, %v418_v34 }
 0x1e6   : > { %1062 = vmatprep.mubr.msk.f32.mxu1 %vm1423_vm1, %v1422_v8  ;;  %1061 = vmatpush3.msk.msra.mxu1 %vm618_vm4, %v996_v59 }
 0x1e7   : > { %1073 = vmatprep.subr.bf16.mxu1 %v1422_v8 }
 0x2ab   : > { %v405_v44 = vpop.f32.mrb[0].mxu0 }
 0x2ac   : > { %v1039_v45 = vpop.f32.mrb[1].mxu0 }
 0x2ad   : > { %v408_v46 = vpop.f32.mrb[2].mxu0 }
 0x2ae   : > { %v1040_v47 = vpop.f32.mrb[3].mxu0 }
 0x2b8   : > { %v472_v48 = vpop.f32.mrb[0].mxu1 }
 0x2b9   : > { %v478_v49 = vmul.f32 0.35355338, %v472_v48  ;;  %v1047_v50 = vpop.f32.mrb[1].mxu1  ;;  %v695_v51 = vrot.slane %v472_v48, %v1717_v17 }
 0x2ba   : > { %v475_v52 = vpop.f32.mrb[2].mxu1 }
 0x2bb   : > { %v520_v53 = vrot.slane %v478_v49, %v1717_v17  ;;  %697 = vrot.lane.b32.xlu1 %v695_v51, %s1426_s28  ;;  %v1048_v54 = vpop.f32.mrb[3].mxu1  ;;  %s1345_s28 = scalar_lea.vmem %s1344_s18, 256 }
 0x2bc   : > { %p1347_p7 = scmp.lt.s32.totalorder %s1345_s28, %s1339_s20 }
 0x2bd   : > { %v521_v55 = vmul.f32 %v520_v53, %v405_v44 }
 0x2be   : > { %p1348_p4 = por %p1347_p7, %p1346_p5 }
 0x2bf   : > { %1058 = vmatmul.mubr.msk.f32.vlgmr.msra.gmra.mrb[4].mxu0 %vm326_vm0, %v521_v55 }
 0x2c0   : > { %1069 = vmatprep.mubr.msk.bf16.mxu0 %vm1423_vm1, %v1422_v8  ;;  %1066 = vmatpush3.bf16.msra.mxu0 %v1185_v32  ;;  %p1349_p1 = pnand %p1348_p4, %p1342_p12 }
 0x2c1   : > { %1067 = vmatprep.subr.bf16.mxu0 %v1422_v8 }
 0x2c4   : > { %1068 = vmatpush3.bf16.msra.mxu0 %v1186_v33 }
 0x32d   : > { %v698_v21 = vpop.permute.xlu1 %697 }
 0x392   : > { %v591_v60 = vpop.f32.mrb[4].mxu0 }
 0x393   : > { %v596_v61 = vsel %vm595_vm6, %v591_v60, -inf  ;;  %v1059_v62 = vpop.f32.mrb[5].mxu0 }
 0x394   : > { %v597_v63 = vrot.slane %v596_v61, 4 }
 0x396   : > { %v598_v1 = vmax.f32 %v596_v61, %v597_v63 }
 0x398   : > { %v599_v2 = vrot.slane %v598_v1, 2 }
 0x39a   : > { %v600_v3 = vmax.f32 %v598_v1, %v599_v2 }
 0x39c   : > { %v601_v4 = vrot.slane %v600_v3, 1 }
 0x39e   : > { %v602_v5 = vmax.f32 %v600_v3, %v601_v4 }
 0x3a0   : > { %v603_v6 = vsub.f32 %v591_v60, %v602_v5 }
 0x3a2   : > { %v604_v7 = vmul.f32 1.442695, %v603_v6 }
 0x3a4   : > { %1191 = vpow2.f32 %v604_v7 }
 0x3ae   : > { %v1192_v9 = vpop.eup %1191 }
 0x3af   : > { %v606_v10 = vsel %vm595_vm6, %v1192_v9, 0.0 }
 0x3b0   : > { %v607_v11 = vrot.slane %v606_v10, 4 }
 0x3b2   : > { %v608_v12 = vadd.f32 %v607_v11, %v606_v10 }
 0x3b4   : > { %v609_v13 = vrot.slane %v608_v12, 2 }
 0x3b6   : > { %v610_v14 = vadd.f32 %v609_v13, %v608_v12 }
 0x3b8   : > { %v611_v15 = vrot.slane %v610_v14, 1 }
 0x3ba   : > { %v612_v17 = vadd.f32 %v611_v15, %v610_v14 }
 0x3bc   : > { %1193 = vrcp.f32 %v612_v17 }
 0x3c6   : > { %v1194_v19 = vpop.eup %1193 }
 0x3c7   : > { %v614_v20 = vmul.f32 %v1194_v19, %v1192_v9 }
 0x3c9   : > { %1063 = vmatmul.mubr.msk.f32.vlgmr.msra.gmra.mrb[4].mxu1 %vm595_vm6, %v614_v20 }
 0x3ca   : > { %1077 = vmatprep.mubr.msk.bf16.mxu1 %vm1423_vm1, %v1422_v8 }
 0x49c   : > { %v688_v22 = vpop.f32.mrb[4].mxu1 }
 0x49d   : > { %v700_v23 = vmul.f32 %v698_v21, %v688_v22  ;;  %v1064_v24 = vpop.f32.mrb[5].mxu1 }
 0x49f   : > { %v701_v25 = vadd.f32 %v700_v23, %v1699_v0  ;;  %v1187_v0 = vld [vmem:[%s1825_s5] sm:$0xff]  }
 0x4a0   : > { %1074 = vmatpush3.bf16.msra.mxu1 %v1187_v0 }
 0x4a1   : > { %v702_v26 = vsel %vm326_vm0, %v701_v25, 0.0  ;;  %1075 = vmatprep.subr.bf16.mxu1 %v1422_v8  ;;  %v1188_v8 = vld [vmem:[%s1825_s5 + $0x8] sm:$0xff]  }
 0x4a2   : > { %703 = vadd.xlane.f32.xlu1 %v702_v26 }
 0x4a4   : > { %1076 = vmatpush3.bf16.msra.mxu1 %v1188_v8 }
 0x52f   : > { %v704_v27 = vpop.xlane.xlu1 %703 }
 0x530   : > { %v705_v28 = vmul.f32 0.03125, %v704_v27 }
 0x532   : > { %v706_v29 = vsub.f32 %v701_v25, %v705_v28 }
 0x534   : > { %v707_v30 = vmul.f32 %v706_v29, %v706_v29 }
 0x536   : > { %v708_v31 = vsel %vm326_vm0, %v707_v30, 0.0 }
 0x537   : > { %709 = vadd.xlane.f32.xlu0 %v708_v31 }
 0x5c4   : > { %v710_v34 = vpop.xlane.xlu0 %709 }
 0x5c5   : > { %v711_v35 = vmul.f32 0.03125, %v710_v34 }
 0x5c7   : > { %v712_v36 = vadd.f32 1e-05, %v711_v35 }
 0x5c9   : > { %1195 = vrsqrt.f32 %v712_v36 }
 0x5d3   : > { %v1196_v40 = vpop.eup %1195 }
 0x5d4   : > { %v714_v41 = vmul.f32 %v1196_v40, %v706_v29 }
 0x5d6   : > { %v719_v43 = vmul.f32 %v718_v39, %v714_v41 }
 0x5d8   : > { %v724_v44 = vadd.f32 %v723_v42, %v719_v43 }
 0x5da   : > { %v725_v45 = vpack.c.bf16 %v724_v44, %v724_v44 }
 0x5dc   : > { %1070 = vmatmul.mubr.msk.bf16.vlgmr.msra.gmra.mrb[8].mxu0 %vm326_vm0, %v725_v45 }
 0x6af   : > { %v779_v46 = vpop.f32.mrb[8].mxu0 }
 0x6b0   : > { %v785_v16 = vmax.f32 %v779_v46, 0.0  ;;  %v1071_v47 = vpop.f32.mrb[9].mxu0 }
 0x6b1   : > { %v782_v48 = vpop.f32.mrb[10].mxu0 }
 0x6b2   : > { %v786_v49 = vpack.c.bf16 %v785_v16, %v785_v16  ;;  %v1072_v50 = vpop.f32.mrb[11].mxu0 }
 0x6b4   : > { %1078 = vmatmul.mubr.msk.bf16.vlgmr.msra.gmra.mrb[8].mxu1 %vm326_vm0, %v786_v49 }
 0x787   : > { %v840_v18 = vpop.f32.mrb[8].mxu1 }
 0x788   : > { %v846_v51 = vadd.f32 %v840_v18, %v701_v25  ;;  %v1079_v52 = vpop.f32.mrb[9].mxu1 }
 0x789   : > { %v843_v53 = vpop.f32.mrb[10].mxu1 }
 0x78a   : > { %v1080_v54 = vpop.f32.mrb[11].mxu1  ;;  %847 = vst.msk [vmem:[%s322_s29] sm:$0xff] %vm326_vm0, %v846_v51 }
 0x78b   : > { %1352 = shalt.err (!%p1349_p1)
}
 0x78c   : > { %s1353_s12 = scalar_lea.hbm %s1775_s13, 128  ;;  %s1357_s11 = scalar_lea.hbm %s1826_s6, 256 }
 0x78d   : > { %p1354_p3 = scmp.ne.s32.totalorder %s1775_s13, %s1353_s12  ;;  %p1358_p0 = scmp.lt.u32.totalorder %s1775_s13, %s1826_s6 }
 0x78e   : > { %p1359_p2 = scmp.lt.u32.totalorder %s1357_s11, %s1353_s12  ;;  %p1361_p6 = scmp.lt.u32.totalorder %s1353_s12, %s1775_s13 }
 0x78f   : > { %p1355_p9 = pnand %p1354_p3, %p1844_p10 }
 0x790   : > { %p1360_p8 = por %p1359_p2, %p1358_p0 }
 0x791   : > { %p1356_p13 = pneg %p1355_p9 }
 0x792   : > { %p1362_p11 = por %p1361_p6, %p1360_p8 }
 0x794   : > { %p1363_p12 = pnand %p1362_p11, %p1356_p13 }
 0x796   : > { %1366 = shalt.err (!%p1363_p12)
}
 0x797   : > { %1105 = dma.vmem_to_hbm [thread:$0]  (%p1844_p10), %s1777_s16, 128, %s1775_s13, %s849_s27  }
 0x798 PF: > { %s874_s29 = sand.u32 1, %s1401_s21   ;;  %p1845_p5 = scmp.ne.s32.totalorder %s1837_s19, 0 }
 0x799   : > { %p1846_p7 = scmp.ge.s32.totalorder %s1413_s24, 2  ;;  %s875_s8 = scalar_lea.sflag [#allocation4], %s874_s29 }
 0x79b   : > { %p1125_p4 = pnand %p1846_p7, %p1845_p5 }
 0x79d   : > { %1396 = dma.done.wait (!%p1125_p4), %s875_s8, 128  }
 0x79e   : > { %1398 = vsyncadd (!%p1125_p4), %s875_s8, 4294967168  ;;  %p21_p1 = scmp.ge.s32.totalorder %s1605_s15, 4   ;;  %s1847_s21 = smov %s1405_s22 }
 0x79f   : > { %s1848_s22 = smov %s1409_s23  ;;  %s1849_s23 = smov %s1616_s26 }
 0x7a0   : > { %s1850_s24 = smov %s1605_s15  ;;  %23 = sbr.rel (!%p21_p1) target bundleno = 7 (0x7), region = 105 }
 0x7a7   :  { %880 = vsyncpa [#allocation3], 1 }
 0x7a8   :  { %882 = vsyncpa [#allocation3 + $0x1], 1 }
 0x7a9   :  { %883 = vsyncpa [#allocation6], 1 }
 0x7aa   :  { %884 = vsyncpa [#allocation9], 1 }
 0x7ab   :  { %885 = vsyncpa [#allocation4], 1 }
 0x7ac   :  { %887 = vsyncpa [#allocation4 + $0x1], 1 }

</bundles_post_ra>
